<compile_context>
chip_gen: v7x
topology: tpu7x:2x2x1
jax: 0.10.0
libtpu: 0.0.40
codegen_flags: <defaults>
</compile_context>

<pallas_src>
import functools
import math

import jax
import jax.numpy as jnp
import numpy as np
from jax.experimental import pallas as pl
from jax.experimental.pallas import tpu as pltpu


def _round_up(x, m):
    return ((x + m - 1) // m) * m


def _cdiv(a, b):
    return -(-a // b)


# ----------------------------------------------------------------------------
# Kernel.  grid = (B, S_pad // tile_s)
# refs: weight (SMEM (1,1) f32), q (1,tile_s,inner), kbd (1,inner,HT),
#       vbd (1,HT,inner), seg (HT,HT) f32  ->  out (1,tile_s,inner)
# ----------------------------------------------------------------------------
def ip_attn_kernel(weight_ref, q_ref, kbd_ref, vbd_ref, seg_ref, o_ref, *, scale):
    q = q_ref[0]            # (tile_s, inner)  compute dtype (bf16 by default)
    kbd = kbd_ref[0]        # (inner, HT)      block-diag per-head k^T
    vbd = vbd_ref[0]        # (HT, inner)      block-diag per-head v
    seg = seg_ref[...]      # (HT, HT) f32     block-diag ones (segment-sum matrix)

    # Scores for ALL heads in one MXU matmul (dense K = inner), f32 accumulate.
    s = jnp.dot(q, kbd, preferred_element_type=jnp.float32) * scale   # (tile_s, HT)

    # Row-wise max shift (all heads).  The per-head softmax stays exact as long as
    # the cross-head score spread is below the f32 exp range (~85 scaled units);
    # the denominator guard below only prevents NaN in that (unreachable) regime.
    m = jnp.max(s, axis=-1, keepdims=True)                            # (tile_s, 1)
    p = jnp.exp(s - m)                                                # lane-dense EUP

    # Exact per-head denominators, broadcast lane-dense via block-ones matmul.
    denom = jnp.dot(p, seg, preferred_element_type=jnp.float32)       # (tile_s, HT)
    p = p / jnp.maximum(denom, jnp.finfo(jnp.float32).tiny)

    # Output for ALL heads in one MXU matmul; single lane-dense (tile_s, inner) store.
    o = jnp.dot(p.astype(vbd.dtype), vbd, preferred_element_type=jnp.float32)
    o_ref[0] = (o * weight_ref[0, 0]).astype(o_ref.dtype)


def _choose_tile_s(S, max_tile):
    """Largest useful 8-aligned seq tile; never degenerates to tiny tiles."""
    max_tile = max(8, (max_tile // 8) * 8)
    if S <= max_tile:
        return _round_up(S, 8)                 # single tile (S padded up if ragged)
    for t in range(max_tile, 127, -8):         # largest multiple-of-8 divisor >= 128
        if S % t == 0:
            return t
    return max_tile                            # no divisor: pad S (masked remainder)


# ----------------------------------------------------------------------------
# Wrapper == PlugableIPAdapter.patch_forward(number)(attn_blk, x, q)
# ----------------------------------------------------------------------------
def ip_adapter_patch_forward(q, image_emb, wk, wv, *, weight=1.0,
                             p_start=0.0, p_end=1.0,
                             current_sampling_percent=0.5,
                             compute_dtype=jnp.bfloat16,
                             max_tile_s=512):
    """q: (B,H,S,D); image_emb: (B,T,C_emb); wk/wv: (H*D, C_emb). Returns (B,S,H*D)."""
    B, H, S, D = q.shape
    inner = H * D
    out_dtype = q.dtype

    # Sampling-percent gate (PyTorch branches on host floats and returns scalar 0).
    if current_sampling_percent < p_start or current_sampling_percent > p_end:
        return jnp.zeros((B, S, inner), dtype=out_dtype)

    T, c_emb = image_emb.shape[1], image_emb.shape[2]
    HT = H * T
    assert wk.shape == (inner, c_emb) and wv.shape == (inner, c_emb)

    # ---- host-side tiny projection: keeps w_kv OUT of kernel-resident VMEM -------
    w_kv = jnp.concatenate([wk, wv], axis=0).T.astype(jnp.float32)        # (C, 2*inner)
    kv = jnp.einsum('btc,ci->bti', image_emb.astype(jnp.float32), w_kv)   # (B,T,2*inner)
    kh = kv[..., :inner].reshape(B, T, H, D)
    vh = kv[..., inner:].reshape(B, T, H, D)

    # Block-diagonal per-head operands:
    #   kbd[b, g*D+d, h*T+t] = k[b,t,h,d]*(g==h)    (B, inner, HT)
    #   vbd[b, h*T+t, g*D+d] = v[b,t,h,d]*(g==h)    (B, HT, inner)
    eye_h = jnp.eye(H, dtype=jnp.float32)
    kbd = jnp.einsum('bthd,gh->bgdht', kh, eye_h).reshape(B, inner, HT).astype(compute_dtype)
    vbd = jnp.einsum('bthd,hg->bhtgd', vh, eye_h).reshape(B, HT, inner).astype(compute_dtype)

    # Segment-sum matrix: seg[i, j] = 1 iff lanes i and j belong to the same head.
    lane_head = jnp.arange(HT) // T
    seg = (lane_head[:, None] == lane_head[None, :]).astype(jnp.float32)  # (HT, HT)

    # q in its lane-dense pre-head-split layout (B, S, inner), streamed in bf16.
    # TODO(synk): in the real UNet hook q exists as (B, S, inner) before the head
    # split; pass it directly there to skip this transpose.
    q_flat = jnp.transpose(q.astype(compute_dtype), (0, 2, 1, 3)).reshape(B, S, inner)

    # ---- tiling: big 8-aligned tiles, ragged S padded, >=2 grid steps for v7x ----
    tile_s = _choose_tile_s(S, max_tile_s)
    if B * _cdiv(S, tile_s) < 2 and tile_s > 8:      # give both v7x TensorCores work
        tile_s = _round_up(_cdiv(S, 2), 8)
    s_pad = _cdiv(S, tile_s) * tile_s
    if s_pad != S:
        q_flat = jnp.pad(q_flat, ((0, 0), (0, s_pad - S), (0, 0)))
    grid = (B, s_pad // tile_s)
    assert tile_s % 8 == 0

    weight_arr = jnp.full((1, 1), weight, dtype=jnp.float32)   # SMEM: no recompile
    scale = 1.0 / math.sqrt(D)
    kernel = functools.partial(ip_attn_kernel, scale=scale)

    bpe = jnp.dtype(compute_dtype).itemsize
    out_bpe = jnp.dtype(out_dtype).itemsize
    cost = pl.CostEstimate(
        flops=2 * B * s_pad * HT * (2 * inner + HT),
        transcendentals=B * s_pad * HT,
        bytes_accessed=(B * s_pad * inner * (bpe + out_bpe)
                        + 2 * B * inner * HT * bpe + HT * HT * 4),
    )
    vmem_est = (4 * tile_s * inner * max(bpe, out_bpe)   # q + out, double-buffered
                + 4 * inner * HT * bpe                   # kbd + vbd, double-buffered
                + 2 * HT * HT * 4)
    vmem_limit = int(min(max(3 * vmem_est, 32 * 1024 * 1024), 48 * 1024 * 1024))

    out = pl.pallas_call(
        kernel,
        out_shape=jax.ShapeDtypeStruct((B, s_pad, inner), out_dtype),
        grid=grid,
        in_specs=[
            pl.BlockSpec(memory_space=pltpu.MemorySpace.SMEM),           # weight
            pl.BlockSpec((1, tile_s, inner), lambda b, si: (b, si, 0)),  # q
            pl.BlockSpec((1, inner, HT), lambda b, si: (b, 0, 0)),       # kbd
            pl.BlockSpec((1, HT, inner), lambda b, si: (b, 0, 0)),       # vbd
            pl.BlockSpec((HT, HT), lambda b, si: (0, 0)),                # seg ones
        ],
        out_specs=pl.BlockSpec((1, tile_s, inner), lambda b, si: (b, si, 0)),
        compiler_params=pltpu.CompilerParams(
            dimension_semantics=("parallel", "parallel"),
            vmem_limit_bytes=vmem_limit),
        cost_estimate=cost,
    )(weight_arr, q_flat, kbd, vbd, seg)

    if s_pad != S:
        out = out[:, :S, :]
    return out


# ----------------------------------------------------------------------------
# Pure-JAX reference for correctness.
# ----------------------------------------------------------------------------
def ip_adapter_reference(q, image_emb, wk, wv, weight):
    B, H, S, D = q.shape
    T = image_emb.shape[1]
    k = jnp.einsum('btc,ic->bti', image_emb, wk).reshape(B, T, H, D).transpose(0, 2, 1, 3)
    v = jnp.einsum('btc,ic->bti', image_emb, wv).reshape(B, T, H, D).transpose(0, 2, 1, 3)
    s = jnp.einsum('bhsd,bhtd->bhst', q, k) / math.sqrt(D)
    p = jax.nn.softmax(s, axis=-1)
    o = jnp.einsum('bhst,bhtd->bhsd', p, v)
    return (o.transpose(0, 2, 1, 3).reshape(B, S, H * D)) * weight


if __name__ == "__main__":
    B, H, S, D = 2, 4, 64, 64          # batch, heads, query seq, head_dim
    inner_dim = H * D                  # 256
    T, C_EMB = 8, 32                   # image tokens, clip embedding dim
    WEIGHT = 0.75

    key = jax.random.PRNGKey(0)
    k_q, k_emb, k_wk, k_wv = jax.random.split(key, 4)

    q = jax.random.normal(k_q, (B, H, S, D), dtype=jnp.float32)
    image_emb = jax.random.normal(k_emb, (B, T, C_EMB), dtype=jnp.float32)
    # to_k_ip / to_v_ip: Linear(C_EMB -> inner_dim, bias=False); weight (out, in)
    wk = 0.02 * jax.random.normal(k_wk, (inner_dim, C_EMB), dtype=jnp.float32)
    wv = 0.02 * jax.random.normal(k_wv, (inner_dim, C_EMB), dtype=jnp.float32)

    ref = ip_adapter_reference(q, image_emb, wk, wv, WEIGHT)

    # f32 compute path: close to the reference.
    out_f32 = jax.block_until_ready(
        ip_adapter_patch_forward(q, image_emb, wk, wv, weight=WEIGHT,
                                 compute_dtype=jnp.float32))
    np.testing.assert_allclose(np.asarray(out_f32), np.asarray(ref),
                               rtol=5e-3, atol=5e-3)

    # bf16 streaming path (production default): bf16-level tolerance.
    out_bf16 = jax.block_until_ready(
        ip_adapter_patch_forward(q, image_emb, wk, wv, weight=WEIGHT))
    np.testing.assert_allclose(np.asarray(out_bf16), np.asarray(ref),
                               rtol=2e-2, atol=1e-2)

    # Ragged S + single-batch path (exercises padding and the >=2-grid-step split).
    S2 = 60
    q2 = jax.random.normal(k_q, (1, H, S2, D), dtype=jnp.float32)
    emb2 = image_emb[:1]
    ref2 = ip_adapter_reference(q2, emb2, wk, wv, WEIGHT)
    out2 = jax.block_until_ready(
        ip_adapter_patch_forward(q2, emb2, wk, wv, weight=WEIGHT))
    np.testing.assert_allclose(np.asarray(out2), np.asarray(ref2),
                               rtol=2e-2, atol=1e-2)

    # Sampling-percent gate (zero-contribution path of the module).
    gated = jax.block_until_ready(
        ip_adapter_patch_forward(q, image_emb, wk, wv, weight=WEIGHT,
                                 p_start=0.2, p_end=0.4,
                                 current_sampling_percent=0.9))
    assert float(jnp.max(jnp.abs(gated))) == 0.0

    # TODO(synk): the UNet-hooking machinery (set_model_attn2_replace /
    # attn_forward_hacked), ImageEmbed averaging / cond_mark eval and the
    # per-layer to_kvs cache are host-side plumbing with no kernel equivalent;
    # only the per-layer compute path is ported.
    print("KERNEL_OK")
</pallas_src>

<mosaic_0001>
module attributes {stable_mosaic.version = 11 : i64} {
  func.func @ip_attn_kernel(%arg0: i32, %arg1: i32, %arg2: memref<1x1xf32, #tpu.memory_space<smem>>, %arg3: memref<1x64x256xf32, #tpu.memory_space<vmem>>, %arg4: memref<1x256x32xf32, #tpu.memory_space<vmem>>, %arg5: memref<1x32x256xf32, #tpu.memory_space<vmem>>, %arg6: memref<32x32xf32, #tpu.memory_space<vmem>>, %arg7: memref<1x64x256xf32, #tpu.memory_space<vmem>>) attributes {dimension_semantics = [#tpu.dimension_semantics<parallel>, #tpu.dimension_semantics<parallel>], iteration_bounds = array<i64: 2, 1>, scalar_prefetch = 0 : i64, scratch_operands = 0 : i64, tpu.core_type = #tpu.core_type<tc>, window_params = [{transform_indices = @transform_0, window_bounds = array<i64: 1, 1>}, {transform_indices = @transform_1, window_bounds = array<i64: 1, 64, 256>}, {transform_indices = @transform_2, window_bounds = array<i64: 1, 256, 32>}, {transform_indices = @transform_3, window_bounds = array<i64: 1, 32, 256>}, {pipeline_mode = #tpu.pipeline_mode<synchronous>, transform_indices = @transform_4, window_bounds = array<i64: 32, 32>}, {transform_indices = @transform_5, window_bounds = array<i64: 1, 64, 256>}]} {
    %c0 = arith.constant 0 : index
    %c0_0 = arith.constant 0 : index
    %c0_1 = arith.constant 0 : index
    %0 = vector.load %arg3[%c0, %c0_0, %c0_1] : memref<1x64x256xf32, #tpu.memory_space<vmem>>, vector<1x64x256xf32>
    %1 = vector.shape_cast %0 : vector<1x64x256xf32> to vector<64x256xf32>
    %c0_2 = arith.constant 0 : index
    %c0_3 = arith.constant 0 : index
    %c0_4 = arith.constant 0 : index
    %2 = vector.load %arg4[%c0_2, %c0_3, %c0_4] : memref<1x256x32xf32, #tpu.memory_space<vmem>>, vector<1x256x32xf32>
    %3 = vector.shape_cast %2 : vector<1x256x32xf32> to vector<256x32xf32>
    %c0_5 = arith.constant 0 : index
    %c0_6 = arith.constant 0 : index
    %c0_7 = arith.constant 0 : index
    %4 = vector.load %arg5[%c0_5, %c0_6, %c0_7] : memref<1x32x256xf32, #tpu.memory_space<vmem>>, vector<1x32x256xf32>
    %5 = vector.shape_cast %4 : vector<1x32x256xf32> to vector<32x256xf32>
    %c0_8 = arith.constant 0 : index
    %c0_9 = arith.constant 0 : index
    %6 = vector.load %arg6[%c0_8, %c0_9] : memref<32x32xf32, #tpu.memory_space<vmem>>, vector<32x32xf32>
    %cst = arith.constant dense<0.000000e+00> : vector<64x32xf32>
    %7 = tpu.matmul %1, %3, %cst {dimension_numbers = #tpu.dot_dimension_numbers<[1], [0], [0], [1], [0, 0, 1, 1], [], []>} : vector<64x256xf32>, vector<256x32xf32>, vector<64x32xf32> -> vector<64x32xf32>
    %cst_10 = arith.constant 1.250000e-01 : f32
    %8 = vector.broadcast %cst_10 : f32 to vector<64x32xf32>
    %9 = arith.mulf %7, %8 : vector<64x32xf32>
    %cst_11 = arith.constant dense<0xFF800000> : vector<64xf32>
    %10 = vector.multi_reduction <maximumf>, %9, %cst_11 [1] : vector<64x32xf32> to vector<64xf32>
    %11 = vector.shape_cast %10 : vector<64xf32> to vector<64x1xf32>
    %12 = vector.broadcast %11 : vector<64x1xf32> to vector<64x32xf32>
    %13 = arith.subf %9, %12 : vector<64x32xf32>
    %14 = math.exp %13 : vector<64x32xf32>
    %cst_12 = arith.constant dense<0.000000e+00> : vector<64x32xf32>
    %15 = tpu.matmul %14, %6, %cst_12 {dimension_numbers = #tpu.dot_dimension_numbers<[1], [0], [0], [1], [0, 0, 1, 1], [], []>} : vector<64x32xf32>, vector<32x32xf32>, vector<64x32xf32> -> vector<64x32xf32>
    %cst_13 = arith.constant 1.17549435E-38 : f32
    %16 = vector.broadcast %cst_13 : f32 to vector<64x32xf32>
    %17 = arith.maximumf %15, %16 : vector<64x32xf32>
    %18 = arith.divf %14, %17 : vector<64x32xf32>
    %cst_14 = arith.constant dense<0.000000e+00> : vector<64x256xf32>
    %19 = tpu.matmul %18, %5, %cst_14 {dimension_numbers = #tpu.dot_dimension_numbers<[1], [0], [0], [1], [0, 0, 1, 1], [], []>} : vector<64x32xf32>, vector<32x256xf32>, vector<64x256xf32> -> vector<64x256xf32>
    %c0_15 = arith.constant 0 : index
    %c0_16 = arith.constant 0 : index
    %20 = memref.load %arg2[%c0_15, %c0_16] : memref<1x1xf32, #tpu.memory_space<smem>>
    %21 = vector.broadcast %20 : f32 to vector<64x256xf32>
    %22 = arith.mulf %19, %21 : vector<64x256xf32>
    %c0_17 = arith.constant 0 : index
    %c0_18 = arith.constant 0 : index
    %c0_19 = arith.constant 0 : index
    %23 = vector.load %arg7[%c0_17, %c0_18, %c0_19] : memref<1x64x256xf32, #tpu.memory_space<vmem>>, vector<1x64x256xf32>
    %24 = vector.shape_cast %23 : vector<1x64x256xf32> to vector<64x256xf32>
    %25 = vector.shape_cast %22 : vector<64x256xf32> to vector<1x64x256xf32>
    tpu.vector_store %arg7[%c0_17, %c0_18, %c0_19], %25 {strides = array<i32>} : memref<1x64x256xf32, #tpu.memory_space<vmem>>, vector<1x64x256xf32>,
    return
  }
  func.func @transform_0(%arg0: i32, %arg1: i32) -> (i32, i32) {
    %c0_i32 = arith.constant 0 : i32
    %c0_i32_0 = arith.constant 0 : i32
    %c0_i32_1 = arith.constant 0 : i32
    return %c0_i32, %c0_i32_0 : i32, i32
  }
  func.func @transform_1(%arg0: i32, %arg1: i32) -> (i32, i32, i32) {
    %c0_i32 = arith.constant 0 : i32
    %c0_i32_0 = arith.constant 0 : i32
    return %arg0, %arg1, %c0_i32 : i32, i32, i32
  }
  func.func @transform_2(%arg0: i32, %arg1: i32) -> (i32, i32, i32) {
    %c0_i32 = arith.constant 0 : i32
    %c0_i32_0 = arith.constant 0 : i32
    %c0_i32_1 = arith.constant 0 : i32
    return %arg0, %c0_i32, %c0_i32_0 : i32, i32, i32
  }
  func.func @transform_3(%arg0: i32, %arg1: i32) -> (i32, i32, i32) {
    %c0_i32 = arith.constant 0 : i32
    %c0_i32_0 = arith.constant 0 : i32
    %c0_i32_1 = arith.constant 0 : i32
    return %arg0, %c0_i32, %c0_i32_0 : i32, i32, i32
  }
  func.func @transform_4(%arg0: i32, %arg1: i32) -> (i32, i32) {
    %c0_i32 = arith.constant 0 : i32
    %c0_i32_0 = arith.constant 0 : i32
    %c0_i32_1 = arith.constant 0 : i32
    return %c0_i32, %c0_i32_0 : i32, i32
  }
  func.func @transform_5(%arg0: i32, %arg1: i32) -> (i32, i32, i32) {
    %c0_i32 = arith.constant 0 : i32
    %c0_i32_0 = arith.constant 0 : i32
    return %arg0, %arg1, %c0_i32 : i32, i32, i32
  }
}

</mosaic_0001>

<bundles_post_ra>
// kernel: tpu_custom_call.1
= control target key start
LH: loop header
LB: loop body
LE: loop exit
PB: predicated region body
PF: predicated region fallthrough
CT: control target
= control target key end

     0   :  { %s1616_s0 = inlined_call_operand.<no memory space> [shape: f32[1,1], index: 0, kind: input, shape index: {}]   ;;  %s1617_s1 = inlined_call_operand.vmem [shape: f32[2,64,256], index: 1, kind: input, shape index: {}]   ;;  %s1618_s2 = inlined_call_operand.vmem [shape: f32[2,256,32], index: 2, kind: input, shape index: {}]   ;;  %s1619_s3 = inlined_call_operand.vmem [shape: f32[2,32,256], index: 3, kind: input, shape index: {}]   ;;  %s1620_s4 = inlined_call_operand.vmem [shape: f32[32,32], index: 4, kind: input, shape index: {}]   ;;  %s1621_s5 = inlined_call_operand.hbm [shape: f32[2,64,256], index: 5, kind: output, shape index: {}]  }
   0x1   :  { %10 = sst [smem:[#allocation2]] %s1616_s0 }
   0x2   :  { %11 = vsyncpa [#allocation4], 0 }
   0x3   :  { %13 = vsyncpa [#allocation4 + $0x1], 0  ;;  %s1347_s20 = smov 0   ;;  %s1349_s21 = smov 0  }
   0x4   :  { %s1351_s22 = smov 0   ;;  %s1353_s23 = smov 0  }
   0x5   :  { %s1355_s24 = smov 0   ;;  %s1357_s25 = smov 0  }
   0x6 LB: > { %s967_s0 = sadd.s32 4294967295, %s1308_s25   ;;  %s968_s26 = sadd.s32 4294967294, %s1308_s25   ;;  %s1308_s25 = sphi %s1357_s25, %s19_s25   ;;  %s1304_s24 = sphi %s1355_s24, %s1628_s24   ;;  %s1300_s23 = sphi %s1353_s23, %s1627_s23   ;;  %s1296_s22 = sphi %s1351_s22, %s1626_s22   ;;  %s1292_s21 = sphi %s1349_s21, %s1625_s21   ;;  %s1288_s20 = sphi %s1347_s20, %s1624_s20  }
   0x7   : > { %s31_s27 = sadd.s32 1, %s1304_s24  ;;  %s162_s28 = sadd.s32 1, %s1296_s22 }
   0x8   : > { %p33_p0 = scmp.ge.s32.totalorder %s31_s27, 2  ;;  %p172_p1 = scmp.ne.s32.totalorder %s1296_s22, %s1292_s21 }
   0x9   : > { %p173_p2 = scmp.eq.s32.totalorder %s967_s0, 1  ;;  %p178_p3 = scmp.ne.s32.totalorder %s1292_s21, %s1288_s20 }
   0xa   : > { %s1630_s27 = smov (%p33_p0, %s31_s27), 0  ;;  %p179_p5 = scmp.eq.s32.totalorder %s968_s26, 1 }
   0xb   : > { %p1387_p4 = por %p173_p2, %p172_p1  ;;  %s157_s30 = ssub.s32 %s1304_s24, %s1630_s27 }
   0xc   : > { %p971_p6 = scmp.ge.s32.totalorder %s1308_s25, 1  ;;  %p160_p7 = scmp.eq.s32.totalorder %s157_s30, 0 }
   0xd   : > { %p1394_p8 = por %p179_p5, %p178_p3  ;;  %p233_p9 = scmp.lt.s32.totalorder %s1308_s25, 3 }
   0xe   : > { %s1400_s7 = scalar_select %p160_p7, %s1296_s22, %s162_s28  }
   0xf   : > { %p234_p10 = pnand %p971_p6, %p233_p9 }
  0x10   : > { %p277_p11 = scmp.lt.s32.totalorder (!%p234_p10), %s1300_s23, 1  ;;  %vm471_vm0 = vcmask (!%p234_p10), 261120   ;;  %s273_s14 = sand.u32 (!%p234_p10), 1, %s1292_s21  }
  0x11   : > { %237 = sbr.rel (%p234_p10) target bundleno = 928 (0x3a0), region = 40  ;;  %s972_s15 = sshll.u32 (!%p234_p10), %s273_s14, 7 }
  0x12   : > { %s1003_s17 = sshll.u32 (!%p234_p10), %s1300_s23, 11  ;;  %s1311_s30 = smov (!%p234_p10), [#allocation3]  }
  0x13   : > { %s1562_s26 = scalar_lea.hbm (!%p234_p10), %s1621_s5, %s1003_s17 }
  0x18   : > { %s1404_s8 = scalar_select %p277_p11, %s1300_s23, 1 }
  0x19   : > { %s1570_s23 = scalar_lea.sflag [#allocation4], %s273_s14 }
  0x1a   : > { %s1001_s9 = sshll.u32 %s1404_s8, 8  ;;  %s1000_s13 = sshll.u32 %s1404_s8, 7 }
  0x1b   : > { %s1410_s12 = scalar_lea.vmem %s1618_s2, %s1001_s9  ;;  %s1430_s16 = scalar_lea.vmem %s1617_s1, %s1000_s13 }
  0x1c   : > { %v330_v0 = vld [vmem:[%s1410_s12 + $0x80] sm:$0xff]  ;;  %v331_v1 = vld [vmem:[%s1410_s12 + $0x88] sm:$0xff]  ;;  %v332_v5 = vld [vmem:[%s1410_s12 + $0x90] sm:$0xff]  ;;  %s1002_s10 = sshll.u32 %s1404_s8, 6  ;;  %s810_s8 = sld [smem:[#allocation2]] }
  0x1d   : > { %v314_v2 = vld [vmem:[%s1410_s12] sm:$0xff]  ;;  %v1092_v3 = vpack.c.bf16 %v331_v1, %v330_v0  ;;  %v315_v4 = vld [vmem:[%s1410_s12 + $0x8] sm:$0xff]  ;;  %v333_v6 = vld [vmem:[%s1410_s12 + $0x98] sm:$0xff]  ;;  %s296_s13 = scalar_lea.vmem %s1619_s3, %s1002_s10  ;;  %s1234_s9 = sshll.u32 %s1311_s30, 4  ;;  %s1235_s9 = int_to_ptr.vmem [resolvable:$false] %s1234_s9 }
  0x1e   : > { %v1094_v7 = vpack.c.bf16 %v315_v4, %v314_v2  ;;  %v1096_v8 = vpack.c.bf16 %v333_v6, %v332_v5  ;;  %v316_v9 = vld [vmem:[%s1410_s12 + $0x10] sm:$0xff]  ;;  %v317_v10 = vld [vmem:[%s1410_s12 + $0x18] sm:$0xff]  ;;  %v334_v11 = vld [vmem:[%s1410_s12 + $0xa0] sm:$0xff]  ;;  %s1236_s10 = scalar_lea.vmem %s1235_s9, 4096 }
  0x1f   : > { %1093 = vmatprep.subr.bf16.mxu0 %v1092_v3  ;;  %v335_v12 = vld [vmem:[%s1410_s12 + $0xa8] sm:$0xff]  ;;  %v1098_v13 = vpack.c.bf16 %v317_v10, %v316_v9  ;;  %v318_v15 = vld [vmem:[%s1410_s12 + $0x20] sm:$0xff]  ;;  %v336_v17 = vld [vmem:[%s1410_s12 + $0xb0] sm:$0xff] }
  0x20   : > { %1095 = vmatpush3.bf16.msra.mxu0 %v1094_v7  ;;  %v1100_v14 = vpack.c.bf16 %v335_v12, %v334_v11  ;;  %v319_v16 = vld [vmem:[%s1410_s12 + $0x28] sm:$0xff]  ;;  %v337_v18 = vld [vmem:[%s1410_s12 + $0xb8] sm:$0xff]  ;;  %v320_v21 = vld [vmem:[%s1410_s12 + $0x30] sm:$0xff] }
  0x21   : > { %1097 = vmatprep.subr.bf16.mxu0 %v1096_v8  ;;  %v1102_v19 = vpack.c.bf16 %v319_v16, %v318_v15  ;;  %v1104_v20 = vpack.c.bf16 %v337_v18, %v336_v17  ;;  %v321_v22 = vld [vmem:[%s1410_s12 + $0x38] sm:$0xff]  ;;  %v338_v23 = vld [vmem:[%s1410_s12 + $0xc0] sm:$0xff]  ;;  %v339_v24 = vld [vmem:[%s1410_s12 + $0xc8] sm:$0xff] }
  0x22   : > { %v299_v25 = vld [vmem:[%s1430_s16 + $0x8] sm:$0xff]  ;;  %v1106_v26 = vpack.c.bf16 %v321_v22, %v320_v21  ;;  %v1108_v27 = vpack.c.bf16 %v339_v24, %v338_v23  ;;  %v322_v28 = vld [vmem:[%s1410_s12 + $0x40] sm:$0xff]  ;;  %v340_v30 = vld [vmem:[%s1410_s12 + $0xd0] sm:$0xff] }
  0x23   : > { %422 = vmatprep.mubr.f32.mxu0 %v299_v25  ;;  %v323_v29 = vld [vmem:[%s1410_s12 + $0x48] sm:$0xff]  ;;  %v341_v31 = vld [vmem:[%s1410_s12 + $0xd8] sm:$0xff]  ;;  %v324_v34 = vld [vmem:[%s1410_s12 + $0x50] sm:$0xff] }
  0x24   : > { %1099 = vmatpush3.bf16.msra.mxu0 %v1098_v13  ;;  %v1110_v32 = vpack.c.bf16 %v323_v29, %v322_v28  ;;  %v1112_v33 = vpack.c.bf16 %v341_v31, %v340_v30  ;;  %v325_v35 = vld [vmem:[%s1410_s12 + $0x58] sm:$0xff]  ;;  %v342_v36 = vld [vmem:[%s1410_s12 + $0xe0] sm:$0xff]  ;;  %v343_v37 = vld [vmem:[%s1410_s12 + $0xe8] sm:$0xff] }
  0x25   : > { %1101 = vmatprep.subr.bf16.mxu0 %v1100_v14  ;;  %v1114_v38 = vpack.c.bf16 %v325_v35, %v324_v34  ;;  %v1116_v39 = vpack.c.bf16 %v343_v37, %v342_v36  ;;  %v326_v40 = vld [vmem:[%s1410_s12 + $0x60] sm:$0xff]  ;;  %v327_v41 = vld [vmem:[%s1410_s12 + $0x68] sm:$0xff]  ;;  %v344_v42 = vld [vmem:[%s1410_s12 + $0xf0] sm:$0xff] }
  0x26   : > { %v345_v43 = vld [vmem:[%s1410_s12 + $0xf8] sm:$0xff]  ;;  %v1118_v44 = vpack.c.bf16 %v327_v41, %v326_v40  ;;  %v328_v46 = vld [vmem:[%s1410_s12 + $0x70] sm:$0xff]  ;;  %v298_v49 = vld [vmem:[%s1430_s16] sm:$0xff] }
  0x27   : > { %v1120_v45 = vpack.c.bf16 %v345_v43, %v344_v42  ;;  %v329_v47 = vld [vmem:[%s1410_s12 + $0x78] sm:$0xff]  ;;  %v300_v51 = vld [vmem:[%s1430_s16 + $0x10] sm:$0xff]  ;;  %v303_v52 = vld [vmem:[%s1430_s16 + $0x28] sm:$0xff] }
  0x28   : > { %1103 = vmatpush3.bf16.msra.mxu0 %v1102_v19  ;;  %v1122_v48 = vpack.c.bf16 %v329_v47, %v328_v46  ;;  %v301_v50 = vld [vmem:[%s1430_s16 + $0x18] sm:$0xff]  ;;  %v302_v53 = vld [vmem:[%s1430_s16 + $0x20] sm:$0xff]  ;;  %v304_v55 = vld [vmem:[%s1430_s16 + $0x30] sm:$0xff] }
  0x29   : > { %1105 = vmatprep.subr.bf16.mxu0 %v1104_v20  ;;  %v305_v54 = vld [vmem:[%s1430_s16 + $0x38] sm:$0xff]  ;;  %v307_v56 = vld [vmem:[%s1430_s16 + $0x48] sm:$0xff]  ;;  %v306_v57 = vld [vmem:[%s1430_s16 + $0x40] sm:$0xff] }
  0x2a   : > { %v309_v58 = vld [vmem:[%s1430_s16 + $0x58] sm:$0xff]  ;;  %v308_v59 = vld [vmem:[%s1430_s16 + $0x50] sm:$0xff]  ;;  %v311_v60 = vld [vmem:[%s1430_s16 + $0x68] sm:$0xff] }
  0x2b   : > { %v310_v61 = vld [vmem:[%s1430_s16 + $0x60] sm:$0xff]  ;;  %v313_v62 = vld [vmem:[%s1430_s16 + $0x78] sm:$0xff]  ;;  %v312_v63 = vld [vmem:[%s1430_s16 + $0x70] sm:$0xff]  ;;  %s1541_s16 = scalar_lea.vmem [#allocation3], %s972_s15 }
  0x2c   : > { %1107 = vmatpush3.bf16.msra.mxu0 %v1106_v26  ;;  %v354_v36 = vld [vmem:[%s1620_s4] sm:$0xff]  ;;  %v355_v37 = vld [vmem:[%s1620_s4 + $0x8] sm:$0xff]  ;;  %v356_v42 = vld [vmem:[%s1620_s4 + $0x10] sm:$0xff]  ;;  %s861_s18 = sshll.u32 %s1541_s16, 4  ;;  %s1564_s18 = int_to_ptr.vmem [resolvable:$true] %s861_s18 }
  0x2d   : > { %1109 = vmatprep.subr.bf16.mxu0 %v1108_v27  ;;  %v1124_v40 = vpack.c.bf16 %v355_v37, %v354_v36  ;;  %v357_v43 = vld [vmem:[%s1620_s4 + $0x18] sm:$0xff]  ;;  %s1230_s28 = scalar_lea.vmem %s1564_s18, 2048  ;;  %p1237_p1 = scmp.lt.s32.totalorder %s1564_s18, %s1235_s9 }
  0x2e   : > { %p1231_p12 = scmp.ne.s32.totalorder %s1564_s18, %s1230_s28  ;;  %p1238_p2 = scmp.lt.s32.totalorder %s1236_s10, %s1230_s28 }
  0x2f   : > { %1125 = vmatprep.subr.bf16.mxu1 %v1124_v40 }
  0x30   : > { %1111 = vmatpush3.bf16.msra.mxu0 %v1110_v32  ;;  %1127 = vmatpush3.bf16.msra.mxu1 %v1124_v40  ;;  %p1232_p13 = pnand %p1231_p12, %p1387_p4  ;;  %p1239_p3 = por %p1238_p2, %p1237_p1 }
  0x31   : > { %1113 = vmatprep.subr.bf16.mxu0 %v1112_v33 }
  0x32   : > { %p1233_p0 = pneg %p1232_p13 }
  0x34   : > { %1115 = vmatpush3.bf16.msra.mxu0 %v1114_v38  ;;  %p1240_p5 = pnand %p1239_p3, %p1233_p0 }
  0x35   : > { %1117 = vmatprep.subr.bf16.mxu0 %v1116_v39 }
  0x38   : > { %1119 = vmatpush3.bf16.msra.mxu0 %v1118_v44 }
  0x39   : > { %1121 = vmatprep.subr.bf16.mxu0 %v1120_v45  ;;  %v1128_v45 = vpack.c.bf16 %v357_v43, %v356_v42 }
  0x3b   : > { %1129 = vmatprep.subr.bf16.mxu1 %v1128_v45 }
  0x3c   : > { %1123 = vmatpush3.bf16.msra.mxu0 %v1122_v48  ;;  %1131 = vmatpush3.bf16.msra.mxu1 %v1128_v45 }
  0x3f   : > { %423 = vmatmul.mubr.f32.vlgmr.msra.gmra.mrb[0].mxu0 %v298_v49 }
  0x40   : > { %427 = vmatprep.mubr.f32.mxu0 %v301_v50 }
  0x43   : > { %428 = vmatmul.mubr.f32.gmra.mrb[2].mxu0 %v300_v51 }
  0x44   : > { %432 = vmatprep.mubr.f32.mxu0 %v303_v52 }
  0x47   : > { %433 = vmatmul.mubr.f32.gmra.mrb[4].mxu0 %v302_v53 }
  0x48   : > { %437 = vmatprep.mubr.f32.mxu0 %v305_v54 }
  0x4b   : > { %438 = vmatmul.mubr.f32.gmra.mrb[6].mxu0 %v304_v55 }
  0x4c   : > { %442 = vmatprep.mubr.f32.mxu0 %v307_v56 }
  0x4f   : > { %443 = vmatmul.mubr.f32.gmra.mrb[8].mxu0 %v306_v57 }
  0x50   : > { %447 = vmatprep.mubr.f32.mxu0 %v309_v58 }
  0x53   : > { %448 = vmatmul.mubr.f32.gmra.mrb[10].mxu0 %v308_v59 }
  0x54   : > { %452 = vmatprep.mubr.f32.mxu0 %v311_v60 }
  0x57   : > { %453 = vmatmul.mubr.f32.gmra.mrb[12].mxu0 %v310_v61 }
  0x58   : > { %457 = vmatprep.mubr.f32.mxu0 %v313_v62 }
  0x5b   : > { %458 = vmatmul.mubr.f32.gmra.mrb[14].mxu0 %v312_v63 }
 0x112   : > { %v1036_v0 = vpop.f32.mrb[0].mxu0 }
 0x113   : > { %v1037_v1 = vpop.f32.mrb[1].mxu0 }
 0x114   : > { %v1038_v2 = vadd.f32 %v1037_v1, %v1036_v0 }
 0x116   : > { %v463_v3 = vmul.f32 0.125, %v1038_v2  ;;  %v1039_v4 = vpop.f32.mrb[2].mxu0 }
 0x117   : > { %v1040_v5 = vpop.f32.mrb[3].mxu0 }
 0x118   : > { %v1041_v6 = vadd.f32 %v1040_v5, %v1039_v4  ;;  %v472_v7 = vsel %vm471_vm0, %v463_v3, -inf }
 0x119   : > { %473 = vmax.xlane.f32.xlu0 %v472_v7 }
 0x11a   : > { %v464_v8 = vmul.f32 0.125, %v1041_v6  ;;  %v1042_v9 = vpop.f32.mrb[4].mxu0 }
 0x11b   : > { %v1043_v10 = vpop.f32.mrb[5].mxu0 }
 0x11c   : > { %v1044_v11 = vadd.f32 %v1043_v10, %v1042_v9  ;;  %v475_v12 = vsel %vm471_vm0, %v464_v8, -inf }
 0x11d   : > { %476 = vmax.xlane.f32.xlu0 %v475_v12 }
 0x11e   : > { %v465_v13 = vmul.f32 0.125, %v1044_v11  ;;  %v1045_v14 = vpop.f32.mrb[6].mxu0 }
 0x11f   : > { %v1046_v15 = vpop.f32.mrb[7].mxu0 }
 0x120   : > { %v1047_v16 = vadd.f32 %v1046_v15, %v1045_v14  ;;  %v478_v17 = vsel %vm471_vm0, %v465_v13, -inf  ;;  %v347_v14 = vld [vmem:[%s296_s13 + $0x8] sm:$0xff]  ;;  %v349_v15 = vld [vmem:[%s296_s13 + $0x18] sm:$0xff] }
 0x121   : > { %479 = vmax.xlane.f32.xlu1 %v478_v17  ;;  %v346_v17 = vld [vmem:[%s296_s13] sm:$0xff] }
 0x122   : > { %v466_v18 = vmul.f32 0.125, %v1047_v16  ;;  %v1048_v19 = vpop.f32.mrb[8].mxu0  ;;  %v1132_v16 = vpack.c.bf16 %v349_v15, %v347_v14 }
 0x123   : > { %v1049_v20 = vpop.f32.mrb[9].mxu0 }
 0x124   : > { %v1050_v21 = vadd.f32 %v1049_v20, %v1048_v19  ;;  %v481_v22 = vsel %vm471_vm0, %v466_v18, -inf  ;;  %1133 = vmatprep.subr.bf16.mxu1 %v1132_v16  ;;  %v351_v20 = vld [vmem:[%s296_s13 + $0x28] sm:$0xff] }
 0x125   : > { %482 = vmax.xlane.f32.xlu1 %v481_v22 }
 0x126   : > { %v467_v23 = vmul.f32 0.125, %v1050_v21  ;;  %v1051_v24 = vpop.f32.mrb[10].mxu0  ;;  %v353_v21 = vld [vmem:[%s296_s13 + $0x38] sm:$0xff] }
 0x127   : > { %v1052_v25 = vpop.f32.mrb[11].mxu0  ;;  %v1136_v22 = vpack.c.bf16 %v353_v21, %v351_v20 }
 0x128   : > { %v1053_v26 = vadd.f32 %v1052_v25, %v1051_v24  ;;  %v484_v27 = vsel %vm471_vm0, %v467_v23, -inf  ;;  %v352_v24 = vld [vmem:[%s296_s13 + $0x30] sm:$0xff] }
 0x129   : > { %485 = vmax.xlane.f32.xlu0 %v484_v27 }
 0x12a   : > { %v468_v28 = vmul.f32 0.125, %v1053_v26  ;;  %v1054_v29 = vpop.f32.mrb[12].mxu0  ;;  %v1310_v26 = vmov 0.0  }
 0x12b   : > { %v1055_v30 = vpop.f32.mrb[13].mxu0 }
 0x12c   : > { %v1056_v31 = vadd.f32 %v1055_v30, %v1054_v29  ;;  %v487_v32 = vsel %vm471_vm0, %v468_v28, -inf }
 0x12d   : > { %488 = vmax.xlane.f32.xlu1 %v487_v32 }
 0x12e   : > { %v469_v33 = vmul.f32 0.125, %v1056_v31  ;;  %v1057_v34 = vpop.f32.mrb[14].mxu0 }
 0x12f   : > { %v1058_v35 = vpop.f32.mrb[15].mxu0 }
 0x130   : > { %v1059_v38 = vadd.f32 %v1058_v35, %v1057_v34  ;;  %v490_v39 = vsel %vm471_vm0, %v469_v33, -inf }
 0x131   : > { %491 = vmax.xlane.f32.xlu0 %v490_v39 }
 0x132   : > { %v470_v41 = vmul.f32 0.125, %v1059_v38 }
 0x134   : > { %v493_v44 = vsel %vm471_vm0, %v470_v41, -inf }
 0x135   : > { %494 = vmax.xlane.f32.xlu1 %v493_v44 }
 0x1a6   : > { %v474_v46 = vpop.xlane.xlu0 %473 }
 0x1a7   : > { %v496_v47 = vsub.f32 %v463_v3, %v474_v46 }
 0x1a9   : > { %v504_v48 = vmul.f32 1.442695, %v496_v47 }
 0x1aa   : > { %v477_v49 = vpop.xlane.xlu0 %476 }
 0x1ab   : > { %1198 = vpow2.f32 %v504_v48  ;;  %v497_v50 = vsub.f32 %v464_v8, %v477_v49 }
 0x1ad   : > { %v506_v51 = vmul.f32 1.442695, %v497_v50 }
 0x1ae   : > { %v480_v52 = vpop.xlane.xlu1 %479 }
 0x1af   : > { %1200 = vpow2.f32 %v506_v51  ;;  %v498_v53 = vsub.f32 %v465_v13, %v480_v52 }
 0x1b1   : > { %v508_v54 = vmul.f32 1.442695, %v498_v53 }
 0x1b2   : > { %v483_v55 = vpop.xlane.xlu1 %482 }
 0x1b3   : > { %1202 = vpow2.f32 %v508_v54  ;;  %v499_v56 = vsub.f32 %v466_v18, %v483_v55  ;;  %v348_v18 = vld [vmem:[%s296_s13 + $0x10] sm:$0xff] }
 0x1b4   : > { %v1134_v19 = vpack.c.bf16 %v348_v18, %v346_v17 }
 0x1b5   : > { %v1486_v57 = vpop.eup %1198  ;;  %v510_v58 = vmul.f32 1.442695, %v499_v56 }
 0x1b6   : > { %1080 = vmatprep.mubr.msk.f32.mxu1 %vm471_vm0, %v1486_v57  ;;  %v486_v59 = vpop.xlane.xlu0 %485 }
 0x1b7   : > { %1204 = vpow2.f32 %v510_v58  ;;  %v500_v60 = vsub.f32 %v467_v23, %v486_v59  ;;  %v350_v23 = vld [vmem:[%s296_s13 + $0x20] sm:$0xff]  ;;  %v811_v59 = vstv %s810_s8 }
 0x1b8   : > { %v1138_v25 = vpack.c.bf16 %v352_v24, %v350_v23 }
 0x1b9   : > { %v1490_v61 = vpop.eup %1200  ;;  %v512_v62 = vmul.f32 1.442695, %v500_v60 }
 0x1ba   : > { %v489_v63 = vpop.xlane.xlu1 %488  ;;  %1081 = vmatmul.mubr.msk.f32.vlgmr.msra.gmra.mrb[0].mxu1 %vm471_vm0, %v1490_v61 }
 0x1bb   : > { %1206 = vpow2.f32 %v512_v62  ;;  %v501_v0 = vsub.f32 %v468_v28, %v489_v63  ;;  %1135 = vmatpush1.bf16.msra.mxu1 %v1134_v19 }
 0x1bc   : > { %1137 = vmatprep.subr.bf16.mxu1 %v1136_v22 }
 0x1bd   : > { %v1494_v1 = vpop.eup %1202  ;;  %v514_v2 = vmul.f32 1.442695, %v501_v0 }
 0x1be   : > { %1083 = vmatprep.mubr.msk.f32.mxu1 %vm471_vm0, %v1494_v1  ;;  %v492_v3 = vpop.xlane.xlu0 %491 }
 0x1bf   : > { %1208 = vpow2.f32 %v514_v2  ;;  %v502_v4 = vsub.f32 %v469_v33, %v492_v3  ;;  %1139 = vmatpush1.bf16.msra.mxu1 %v1138_v25 }
 0x1c1   : > { %v1498_v5 = vpop.eup %1204  ;;  %v516_v6 = vmul.f32 1.442695, %v502_v4 }
 0x1c2   : > { %v495_v7 = vpop.xlane.xlu1 %494  ;;  %1084 = vmatmul.mubr.msk.f32.gmra.mrb[2].mxu1 %vm471_vm0, %v1498_v5 }
 0x1c3   : > { %1210 = vpow2.f32 %v516_v6  ;;  %v503_v8 = vsub.f32 %v470_v41, %v495_v7 }
 0x1c5   : > { %v1502_v9 = vpop.eup %1206  ;;  %v518_v10 = vmul.f32 1.442695, %v503_v8 }
 0x1c6   : > { %1086 = vmatprep.mubr.msk.f32.mxu1 %vm471_vm0, %v1502_v9 }
 0x1c7   : > { %1212 = vpow2.f32 %v518_v10 }
 0x1c9   : > { %v1506_v11 = vpop.eup %1208 }
 0x1ca   : > { %1087 = vmatmul.mubr.msk.f32.gmra.mrb[4].mxu1 %vm471_vm0, %v1506_v11 }
 0x1cd   : > { %v1510_v12 = vpop.eup %1210 }
 0x1ce   : > { %1089 = vmatprep.mubr.msk.f32.mxu1 %vm471_vm0, %v1510_v12 }
 0x1d1   : > { %v1514_v13 = vpop.eup %1212 }
 0x1d2   : > { %1090 = vmatmul.mubr.msk.f32.gmra.mrb[6].mxu1 %vm471_vm0, %v1514_v13 }
 0x1d3   : > { %761 = vmatprep.mubr.f32.mxu1 %v1310_v26 }
 0x28d   : > { %v1082_v27 = vpop.f32.mrb[0].mxu1 }
 0x28e   : > { %v610_v28 = vpop.f32.mrb[1].mxu1  ;;  %v650_v29 = vmax.f32 %v1082_v27, 1.1754944e-38 }
 0x28f   : > { %v649_v30 = vmax.f32 %v610_v28, 1.1754944e-38 }
 0x291   : > { %1214 = vrcp.f32 %v649_v30 }
 0x292   : > { %1216 = vrcp.f32 %v650_v29 }
 0x295   : > { %v1085_v31 = vpop.f32.mrb[2].mxu1 }
 0x296   : > { %v620_v32 = vpop.f32.mrb[3].mxu1  ;;  %v652_v33 = vmax.f32 %v1085_v31, 1.1754944e-38 }
 0x297   : > { %v651_v34 = vmax.f32 %v620_v32, 1.1754944e-38 }
 0x299   : > { %1218 = vrcp.f32 %v651_v34 }
 0x29a   : > { %1220 = vrcp.f32 %v652_v33 }
 0x29b   : > { %v1215_v35 = vpop.eup %1214 }
 0x29c   : > { %v658_v36 = vmul.f32 %v1215_v35, %v1486_v57  ;;  %v1217_v37 = vpop.eup %1216 }
 0x29d   : > { %v1088_v38 = vpop.f32.mrb[4].mxu1  ;;  %v660_v42 = vmul.f32 %v1217_v37, %v1490_v61 }
 0x29e   : > { %v630_v39 = vpop.f32.mrb[5].mxu1  ;;  %987 = vmatmul.mubr.msk.f32.vlgmr.msra.gmra.mrb[8].mxu1 %vm471_vm0, %v658_v36  ;;  %v654_v40 = vmax.f32 %v1088_v38, 1.1754944e-38 }
 0x29f   : > { %v653_v41 = vmax.f32 %v630_v39, 1.1754944e-38  ;;  %767 = vmatprep.mubr.f32.mxu1 %v1310_v26 }
 0x2a1   : > { %1222 = vrcp.f32 %v653_v41 }
 0x2a2   : > { %988 = vmatmul.mubr.msk.f32.gmra.mrb[10].mxu1 %vm471_vm0, %v660_v42  ;;  %1224 = vrcp.f32 %v654_v40 }
 0x2a3   : > { %v1219_v43 = vpop.eup %1218  ;;  %773 = vmatprep.mubr.f32.mxu1 %v1310_v26 }
 0x2a4   : > { %v662_v44 = vmul.f32 %v1219_v43, %v1494_v1  ;;  %v1221_v45 = vpop.eup %1220 }
 0x2a5   : > { %v1091_v46 = vpop.f32.mrb[6].mxu1  ;;  %v664_v50 = vmul.f32 %v1221_v45, %v1498_v5 }
 0x2a6   : > { %v640_v47 = vpop.f32.mrb[7].mxu1  ;;  %989 = vmatmul.mubr.msk.f32.gmra.mrb[12].mxu1 %vm471_vm0, %v662_v44  ;;  %v656_v48 = vmax.f32 %v1091_v46, 1.1754944e-38 }
 0x2a7   : > { %v655_v49 = vmax.f32 %v640_v47, 1.1754944e-38  ;;  %779 = vmatprep.mubr.f32.mxu1 %v1310_v26 }
 0x2a9   : > { %1226 = vrcp.f32 %v655_v49 }
 0x2aa   : > { %990 = vmatmul.mubr.msk.f32.gmra.mrb[14].mxu1 %vm471_vm0, %v664_v50  ;;  %1228 = vrcp.f32 %v656_v48 }
 0x2ab   : > { %v1223_v51 = vpop.eup %1222  ;;  %785 = vmatprep.mubr.f32.mxu1 %v1310_v26 }
 0x2ac   : > { %v666_v52 = vmul.f32 %v1223_v51, %v1502_v9  ;;  %v1225_v53 = vpop.eup %1224 }
 0x2ad   : > { %v668_v54 = vmul.f32 %v1225_v53, %v1506_v11 }
 0x2ae   : > { %991 = vmatmul.mubr.msk.f32.gmra.mrb[16].mxu1 %vm471_vm0, %v666_v52 }
 0x2af   : > { %791 = vmatprep.mubr.f32.mxu1 %v1310_v26 }
 0x2b2   : > { %992 = vmatmul.mubr.msk.f32.gmra.mrb[18].mxu1 %vm471_vm0, %v668_v54 }
 0x2b3   : > { %v1227_v55 = vpop.eup %1226  ;;  %797 = vmatprep.mubr.f32.mxu1 %v1310_v26 }
 0x2b4   : > { %v670_v56 = vmul.f32 %v1227_v55, %v1510_v12  ;;  %v1229_v57 = vpop.eup %1228 }
 0x2b5   : > { %v672_v58 = vmul.f32 %v1229_v57, %v1514_v13 }
 0x2b6   : > { %993 = vmatmul.mubr.msk.f32.gmra.mrb[20].mxu1 %vm471_vm0, %v670_v56 }
 0x2b7   : > { %803 = vmatprep.mubr.f32.mxu1 %v1310_v26 }
 0x2ba   : > { %994 = vmatmul.mubr.msk.f32.gmra.mrb[22].mxu1 %vm471_vm0, %v672_v58 }
 0x371   : > { %v763_v60 = vpop.f32.mrb[8].mxu1 }
 0x372   : > { %v812_v61 = vmul.f32 %v811_v59, %v763_v60  ;;  %v765_v62 = vpop.f32.mrb[9].mxu1 }
 0x373   : > { %v813_v63 = vmul.f32 %v811_v59, %v765_v62 }
 0x374   : > { %828 = vst [vmem:[%s1541_s16] sm:$0xff] %v812_v61 }
 0x375   : > { %829 = vst [vmem:[%s1541_s16 + $0x8] sm:$0xff] %v813_v63  ;;  %v769_v0 = vpop.f32.mrb[10].mxu1 }
 0x376   : > { %v814_v1 = vmul.f32 %v811_v59, %v769_v0  ;;  %v771_v2 = vpop.f32.mrb[11].mxu1 }
 0x377   : > { %v815_v3 = vmul.f32 %v811_v59, %v771_v2 }
 0x378   : > { %830 = vst [vmem:[%s1541_s16 + $0x10] sm:$0xff] %v814_v1 }
 0x379   : > { %831 = vst [vmem:[%s1541_s16 + $0x18] sm:$0xff] %v815_v3  ;;  %v775_v4 = vpop.f32.mrb[12].mxu1 }
 0x37a   : > { %v816_v5 = vmul.f32 %v811_v59, %v775_v4  ;;  %v777_v6 = vpop.f32.mrb[13].mxu1 }
 0x37b   : > { %v817_v7 = vmul.f32 %v811_v59, %v777_v6 }
 0x37c   : > { %832 = vst [vmem:[%s1541_s16 + $0x20] sm:$0xff] %v816_v5 }
 0x37d   : > { %833 = vst [vmem:[%s1541_s16 + $0x28] sm:$0xff] %v817_v7  ;;  %v781_v8 = vpop.f32.mrb[14].mxu1 }
 0x37e   : > { %v818_v9 = vmul.f32 %v811_v59, %v781_v8  ;;  %v783_v10 = vpop.f32.mrb[15].mxu1 }
 0x37f   : > { %v819_v11 = vmul.f32 %v811_v59, %v783_v10 }
 0x380   : > { %834 = vst [vmem:[%s1541_s16 + $0x30] sm:$0xff] %v818_v9 }
 0x381   : > { %835 = vst [vmem:[%s1541_s16 + $0x38] sm:$0xff] %v819_v11  ;;  %v787_v12 = vpop.f32.mrb[16].mxu1 }
 0x382   : > { %v820_v13 = vmul.f32 %v811_v59, %v787_v12  ;;  %v789_v14 = vpop.f32.mrb[17].mxu1 }
 0x383   : > { %v821_v15 = vmul.f32 %v811_v59, %v789_v14 }
 0x384   : > { %836 = vst [vmem:[%s1541_s16 + $0x40] sm:$0xff] %v820_v13 }
 0x385   : > { %837 = vst [vmem:[%s1541_s16 + $0x48] sm:$0xff] %v821_v15  ;;  %v793_v16 = vpop.f32.mrb[18].mxu1 }
 0x386   : > { %v822_v17 = vmul.f32 %v811_v59, %v793_v16  ;;  %v795_v18 = vpop.f32.mrb[19].mxu1 }
 0x387   : > { %v823_v19 = vmul.f32 %v811_v59, %v795_v18 }
 0x388   : > { %838 = vst [vmem:[%s1541_s16 + $0x50] sm:$0xff] %v822_v17 }
 0x389   : > { %839 = vst [vmem:[%s1541_s16 + $0x58] sm:$0xff] %v823_v19  ;;  %v799_v20 = vpop.f32.mrb[20].mxu1 }
 0x38a   : > { %v824_v21 = vmul.f32 %v811_v59, %v799_v20  ;;  %v801_v22 = vpop.f32.mrb[21].mxu1 }
 0x38b   : > { %v825_v23 = vmul.f32 %v811_v59, %v801_v22 }
 0x38c   : > { %840 = vst [vmem:[%s1541_s16 + $0x60] sm:$0xff] %v824_v21 }
 0x38d   : > { %841 = vst [vmem:[%s1541_s16 + $0x68] sm:$0xff] %v825_v23  ;;  %v805_v24 = vpop.f32.mrb[22].mxu1 }
 0x38e   : > { %v826_v25 = vmul.f32 %v811_v59, %v805_v24  ;;  %v807_v26 = vpop.f32.mrb[23].mxu1 }
 0x38f   : > { %v827_v27 = vmul.f32 %v811_v59, %v807_v26 }
 0x390   : > { %842 = vst [vmem:[%s1541_s16 + $0x70] sm:$0xff] %v826_v25 }
 0x391   : > { %843 = vst [vmem:[%s1541_s16 + $0x78] sm:$0xff] %v827_v27 }
 0x392   : > { %1243 = shalt.err (!%p1240_p5)
}
 0x393   : > { %s1244_s11 = scalar_lea.hbm %s1562_s26, 2048  ;;  %s1248_s8 = scalar_lea.hbm %s1621_s5, 4096 }
 0x394   : > { %p1245_p6 = scmp.ne.s32.totalorder %s1562_s26, %s1244_s11  ;;  %p1249_p10 = scmp.lt.u32.totalorder %s1562_s26, %s1621_s5 }
 0x395   : > { %p1250_p11 = scmp.lt.u32.totalorder %s1248_s8, %s1244_s11  ;;  %p1252_p13 = scmp.lt.u32.totalorder %s1244_s11, %s1562_s26 }
 0x396   : > { %p1246_p7 = pnand %p1245_p6, %p1387_p4 }
 0x397   : > { %p1251_p12 = por %p1250_p11, %p1249_p10 }
 0x398   : > { %p1247_p9 = pneg %p1246_p7 }
 0x399   : > { %p1253_p0 = por %p1252_p13, %p1251_p12 }
 0x39b   : > { %p1254_p1 = pnand %p1253_p0, %p1247_p9 }
 0x39d   : > { %1257 = shalt.err (!%p1254_p1)
}
 0x39e   : > { %s1312_s16 = smov 256   ;;  %s1313_s17 = smov 16  }
 0x39f   : > { %1140 = dma.vmem_to_hbm [thread:$0]  (%p1387_p4), %s1564_s18, 2048, %s1562_s26, %s1570_s23, %s1312_s16, %s1312_s16, %s1313_s17  }
 0x3a0 PF: > { %p1146_p2 = scmp.ge.s32.totalorder %s1308_s25, 2  ;;  %s876_s19 = sand.u32 1, %s1288_s20  }
 0x3a1   : > { %s877_s0 = scalar_lea.sflag [#allocation4], %s876_s19 }
 0x3a2   : > { %p1143_p3 = pnand %p1146_p2, %p1394_p8 }
 0x3a4   : > { %1283 = dma.done.wait (!%p1143_p3), %s877_s0, 2048  }
 0x3a5   : > { %1285 = vsyncadd (!%p1143_p3), %s877_s0, 4294965248  ;;  %s19_s25 = sadd.s32 1, %s1308_s25   ;;  %s1624_s20 = smov %s1292_s21 }
 0x3a6   : > { %p16_p5 = scmp.ge.s32.totalorder %s19_s25, 4   ;;  %s1625_s21 = smov %s1296_s22 }
 0x3a7   : > { %s1626_s22 = smov %s1400_s7  ;;  %s1627_s23 = smov %s1304_s24 }
 0x3a8   : > { %s1628_s24 = smov %s1630_s27  ;;  %18 = sbr.rel (!%p16_p5) target bundleno = 6 (0x6), region = 81 }
 0x3af   :  { %882 = vsyncpa [#allocation4], 1 }
 0x3b0   :  { %884 = vsyncpa [#allocation4 + $0x1], 1 }

</bundles_post_ra>
